<compile_context>
chip_gen: v7x
topology: tpu7x:2x2x1
jax: 0.10.0
libtpu: 0.0.40
codegen_flags: <defaults>
</compile_context>

<pallas_src>
import jax
import jax.numpy as jnp
from jax.experimental import pallas as pl
from jax.experimental.pallas import tpu as pltpu

BN_EPS = 1e-5


def gnn_kernel(g_ref, s_ref, ea_ref, x_ref, w_ref, gamma_ref, beta_ref, o_ref):
    """Forward pass for ONE graph (one grid step); everything resident in VMEM.

    g_ref    : (E, N)      bf16 one-hot gather matrix (row e selects src node of edge e)
    s_ref    : (N, E)      bf16 one-hot scatter matrix (row i sums edges whose dst is i)
    ea_ref   : (E, Fp)     f32 edge attributes (feature axis zero-padded to Fp)
    x_ref    : (N, Fp)     f32 node features (zero-padded)
    w_ref    : (L, Fp, Fp) bf16 per-layer conv weights (applied as x @ W; zero-padded)
    gamma_ref: (L, 1, Fp)  f32 BatchNorm scale (padded lanes = 1)
    beta_ref : (L, 1, Fp)  f32 BatchNorm shift (padded lanes = 0)
    o_ref    : (N, Fp)     output node features (lane-dense store)
    """
    x = x_ref[...]                     # f32 — elementwise state stays f32
    g = g_ref[...]                     # bf16 0/1
    s = s_ref[...]                     # bf16 0/1
    ea = ea_ref[...]                   # f32

    n_nodes = x.shape[0]
    inv_n = 1.0 / n_nodes
    prev = x

    n_layers = w_ref.shape[0]
    for l in range(n_layers):          # static unroll, nlayer is small
        # hoisted per-layer parameter reads (W already bf16 — no in-kernel cast)
        w = w_ref[l]                   # (Fp, Fp) bf16 MXU operand
        gamma = gamma_ref[l]           # (1, Fp) f32
        beta = beta_ref[l]             # (1, Fp) f32

        # --- message passing (GINE-style, eps = 0); MXU in bf16, f32 accumulation ---
        x_src = jnp.dot(g, x.astype(jnp.bfloat16),
                        preferred_element_type=jnp.float32)          # (E, Fp) gather x[src]
        msg = jnp.maximum(x_src + ea, 0.0)                           # relu(x_j + e_ji), f32
        agg = jnp.dot(s, msg.astype(jnp.bfloat16),
                      preferred_element_type=jnp.float32)            # (N, Fp) scatter-add
        h = jnp.dot((x + agg).astype(jnp.bfloat16), w,
                    preferred_element_type=jnp.float32)              # bias-free Linear

        # --- relu ---
        h = jnp.maximum(h, 0.0)

        # --- BatchNorm1d over nodes (training-mode batch stats) ---
        # Centered two-pass variance (avoids E[h^2]-E[h]^2 cancellation) with the
        # affine folded into the final pass: out = (h-mean)*scale + beta.
        mean = jnp.sum(h, axis=0, keepdims=True) * inv_n             # (1, Fp)
        d = h - mean                                                  # centered activations
        var = jnp.sum(d * d, axis=0, keepdims=True) * inv_n          # biased variance
        scale = gamma * jax.lax.rsqrt(var + BN_EPS)                   # (1, Fp) vreg-sized math
        h = d * scale + beta                                          # single fused VPU pass

        # --- dropout(p=0) is identity; residual ---
        h = h + prev
        prev = h
        x = h

    o_ref[...] = x.astype(o_ref.dtype)   # lane-dense (Fp multiple of 128) store


def _padded_feature_dim(f_dim):
    return ((f_dim + 127) // 128) * 128


def prepare_params(conv_w, bn_gamma, bn_beta):
    """Call-invariant parameter prep: pad feature axes to 128 lanes, W -> bf16 in HBM."""
    f_dim = conv_w.shape[-1]
    pad = _padded_feature_dim(f_dim) - f_dim
    w_p = jnp.pad(conv_w, ((0, 0), (0, pad), (0, pad))).astype(jnp.bfloat16)
    gamma_p = jnp.pad(bn_gamma, ((0, 0), (0, 0), (0, pad)), constant_values=1.0)
    beta_p = jnp.pad(bn_beta, ((0, 0), (0, 0), (0, pad)))
    return w_p, gamma_p, beta_p


def gnn_forward(x, edge_index, edge_attr, w_p, gamma_p, beta_p):
    """Batched forward: B independent graphs (== B independent module forward calls).

    x         : (B, N, F)  node features
    edge_index: (B, 2, E)  int32 src/dst node indices per graph
    edge_attr : (B, E, F)  edge features
    w_p/gamma_p/beta_p : outputs of prepare_params (shared across graphs)
    """
    b_graphs, n_nodes, f_dim = x.shape
    n_edges = edge_attr.shape[1]
    n_layers = w_p.shape[0]
    f_pad = w_p.shape[-1]
    pad = f_pad - f_dim

    # Zero-pad the feature axis; padded lanes stay exactly zero through all layers.
    x_p = jnp.pad(x, ((0, 0), (0, 0), (0, pad)))
    ea_p = jnp.pad(edge_attr, ((0, 0), (0, 0), (0, pad)))

    src = edge_index[:, 0]                                       # (B, E)
    dst = edge_index[:, 1]                                       # (B, E)
    # 0/1 matrices: bf16 is exact, half the bytes of f32.  S built directly with
    # the node axis first (no transpose materialized in HBM).
    G = jax.nn.one_hot(src, n_nodes, dtype=jnp.bfloat16)         # (B, E, N)
    S = jax.nn.one_hot(dst, n_nodes, axis=1, dtype=jnp.bfloat16)  # (B, N, E)

    grid_spec = pltpu.PrefetchScalarGridSpec(
        num_scalar_prefetch=0,
        grid=(b_graphs,),
        in_specs=[
            pl.BlockSpec((None, n_edges, n_nodes), lambda b: (b, 0, 0)),   # G  (per graph)
            pl.BlockSpec((None, n_nodes, n_edges), lambda b: (b, 0, 0)),   # S  (per graph)
            pl.BlockSpec((None, n_edges, f_pad), lambda b: (b, 0, 0)),     # edge_attr
            pl.BlockSpec((None, n_nodes, f_pad), lambda b: (b, 0, 0)),     # x
            pl.BlockSpec((n_layers, f_pad, f_pad), lambda b: (0, 0, 0)),   # W (resident)
            pl.BlockSpec((n_layers, 1, f_pad), lambda b: (0, 0, 0)),       # gamma (resident)
            pl.BlockSpec((n_layers, 1, f_pad), lambda b: (0, 0, 0)),       # beta (resident)
        ],
        out_specs=pl.BlockSpec((None, n_nodes, f_pad), lambda b: (b, 0, 0)),
    )

    out_p = pl.pallas_call(
        gnn_kernel,
        out_shape=jax.ShapeDtypeStruct((b_graphs, n_nodes, f_pad), x.dtype),
        grid_spec=grid_spec,
        compiler_params=pltpu.CompilerParams(
            # Graph axis is embarrassingly parallel -> megacore sharding on v7x,
            # pipelined prefetch of the next graph on v5e/v6e.
            dimension_semantics=("parallel",),
            # ~0.3 MB resident today; re-derive (double-buffered tiles, <64 MiB
            # on v7x) when edge/node tiling lands for larger graphs.
            vmem_limit_bytes=32 * 1024 * 1024,
        ),
    )(G, S, ea_p, x_p, w_p, gamma_p, beta_p)

    # output_encoder is Identity (nin == nout); drop the padded lanes.
    return out_p[:, :, :f_dim]


if __name__ == "__main__":
    # Small synthetic batch: B=4 graphs, nin = nout = 32 (output_encoder == Identity),
    # 3 conv layers, 16 nodes / 48 edges per graph.
    B_GRAPHS = 4
    N_NODES = 16
    N_EDGES = 48
    F_DIM = 32
    N_LAYERS = 3

    key = jax.random.PRNGKey(0)
    k_x, k_ea, k_src, k_dst, k_w, k_g, k_b = jax.random.split(key, 7)

    x = jax.random.normal(k_x, (B_GRAPHS, N_NODES, F_DIM), dtype=jnp.float32)
    edge_attr = jax.random.normal(k_ea, (B_GRAPHS, N_EDGES, F_DIM), dtype=jnp.float32)
    src = jax.random.randint(k_src, (B_GRAPHS, N_EDGES), 0, N_NODES, dtype=jnp.int32)
    dst = jax.random.randint(k_dst, (B_GRAPHS, N_EDGES), 0, N_NODES, dtype=jnp.int32)
    edge_index = jnp.stack([src, dst], axis=1)  # (B, 2, E)

    # Deterministic parameter init (synthetic; not a checkpoint load).
    conv_w = jax.random.normal(k_w, (N_LAYERS, F_DIM, F_DIM), dtype=jnp.float32) * 0.1
    bn_gamma = 1.0 + 0.01 * jax.random.normal(k_g, (N_LAYERS, 1, F_DIM), dtype=jnp.float32)
    bn_beta = 0.01 * jax.random.normal(k_b, (N_LAYERS, 1, F_DIM), dtype=jnp.float32)

    # Call-invariant prep done once, outside the per-call path.
    w_p, gamma_p, beta_p = prepare_params(conv_w, bn_gamma, bn_beta)

    fwd = jax.jit(gnn_forward)
    out = fwd(x, edge_index, edge_attr, w_p, gamma_p, beta_p)
    jax.block_until_ready(out)
    assert out.shape == (B_GRAPHS, N_NODES, F_DIM)
    print("KERNEL_OK")
</pallas_src>

<mosaic_0001>
module attributes {stable_mosaic.version = 11 : i64} {
  func.func @gnn_kernel(%arg0: i32, %arg1: memref<1x48x16xbf16, #tpu.memory_space<vmem>>, %arg2: memref<1x16x48xbf16, #tpu.memory_space<vmem>>, %arg3: memref<1x48x128xf32, #tpu.memory_space<vmem>>, %arg4: memref<1x16x128xf32, #tpu.memory_space<vmem>>, %arg5: memref<3x128x128xbf16, #tpu.memory_space<vmem>>, %arg6: memref<3x1x128xf32, #tpu.memory_space<vmem>>, %arg7: memref<3x1x128xf32, #tpu.memory_space<vmem>>, %arg8: memref<1x16x128xf32, #tpu.memory_space<vmem>>) attributes {dimension_semantics = [#tpu.dimension_semantics<parallel>], iteration_bounds = array<i64: 4>, scalar_prefetch = 0 : i64, scratch_operands = 0 : i64, tpu.core_type = #tpu.core_type<tc>, window_params = [{transform_indices = @transform_0, window_bounds = array<i64: 1, 48, 16>}, {transform_indices = @transform_1, window_bounds = array<i64: 1, 16, 48>}, {transform_indices = @transform_2, window_bounds = array<i64: 1, 48, 128>}, {transform_indices = @transform_3, window_bounds = array<i64: 1, 16, 128>}, {pipeline_mode = #tpu.pipeline_mode<synchronous>, transform_indices = @transform_4, window_bounds = array<i64: 3, 128, 128>}, {pipeline_mode = #tpu.pipeline_mode<synchronous>, transform_indices = @transform_5, window_bounds = array<i64: 3, 1, 128>}, {pipeline_mode = #tpu.pipeline_mode<synchronous>, transform_indices = @transform_6, window_bounds = array<i64: 3, 1, 128>}, {transform_indices = @transform_7, window_bounds = array<i64: 1, 16, 128>}]} {
    %c0 = arith.constant 0 : index
    %c0_0 = arith.constant 0 : index
    %c0_1 = arith.constant 0 : index
    %0 = vector.load %arg4[%c0, %c0_0, %c0_1] : memref<1x16x128xf32, #tpu.memory_space<vmem>>, vector<1x16x128xf32>
    %1 = vector.shape_cast %0 : vector<1x16x128xf32> to vector<16x128xf32>
    %c0_2 = arith.constant 0 : index
    %c0_3 = arith.constant 0 : index
    %c0_4 = arith.constant 0 : index
    %2 = vector.load %arg1[%c0_2, %c0_3, %c0_4] : memref<1x48x16xbf16, #tpu.memory_space<vmem>>, vector<1x48x16xbf16>
    %3 = vector.shape_cast %2 : vector<1x48x16xbf16> to vector<48x16xbf16>
    %c0_5 = arith.constant 0 : index
    %c0_6 = arith.constant 0 : index
    %c0_7 = arith.constant 0 : index
    %4 = vector.load %arg2[%c0_5, %c0_6, %c0_7] : memref<1x16x48xbf16, #tpu.memory_space<vmem>>, vector<1x16x48xbf16>
    %5 = vector.shape_cast %4 : vector<1x16x48xbf16> to vector<16x48xbf16>
    %c0_8 = arith.constant 0 : index
    %c0_9 = arith.constant 0 : index
    %c0_10 = arith.constant 0 : index
    %6 = vector.load %arg3[%c0_8, %c0_9, %c0_10] : memref<1x48x128xf32, #tpu.memory_space<vmem>>, vector<1x48x128xf32>
    %7 = vector.shape_cast %6 : vector<1x48x128xf32> to vector<48x128xf32>
    %c0_11 = arith.constant 0 : index
    %c0_12 = arith.constant 0 : index
    %c0_13 = arith.constant 0 : index
    %8 = vector.load %arg5[%c0_11, %c0_12, %c0_13] : memref<3x128x128xbf16, #tpu.memory_space<vmem>>, vector<1x128x128xbf16>
    %9 = vector.shape_cast %8 : vector<1x128x128xbf16> to vector<128x128xbf16>
    %c0_14 = arith.constant 0 : index
    %c0_15 = arith.constant 0 : index
    %c0_16 = arith.constant 0 : index
    %10 = vector.load %arg6[%c0_14, %c0_15, %c0_16] : memref<3x1x128xf32, #tpu.memory_space<vmem>>, vector<1x1x128xf32>
    %11 = vector.shape_cast %10 : vector<1x1x128xf32> to vector<1x128xf32>
    %c0_17 = arith.constant 0 : index
    %c0_18 = arith.constant 0 : index
    %c0_19 = arith.constant 0 : index
    %12 = vector.load %arg7[%c0_17, %c0_18, %c0_19] : memref<3x1x128xf32, #tpu.memory_space<vmem>>, vector<1x1x128xf32>
    %13 = vector.shape_cast %12 : vector<1x1x128xf32> to vector<1x128xf32>
    %14 = arith.truncf %1 : vector<16x128xf32> to vector<16x128xbf16>
    %cst = arith.constant dense<0.000000e+00> : vector<48x128xf32>
    %15 = tpu.matmul %3, %14, %cst {dimension_numbers = #tpu.dot_dimension_numbers<[1], [0], [0], [1], [0, 0, 1, 1], [], []>} : vector<48x16xbf16>, vector<16x128xbf16>, vector<48x128xf32> -> vector<48x128xf32>
    %16 = arith.addf %15, %7 : vector<48x128xf32>
    %cst_20 = arith.constant 0.000000e+00 : f32
    %17 = vector.broadcast %cst_20 : f32 to vector<48x128xf32>
    %18 = arith.maximumf %16, %17 : vector<48x128xf32>
    %19 = arith.truncf %18 : vector<48x128xf32> to vector<48x128xbf16>
    %cst_21 = arith.constant dense<0.000000e+00> : vector<16x128xf32>
    %20 = tpu.matmul %5, %19, %cst_21 {dimension_numbers = #tpu.dot_dimension_numbers<[1], [0], [0], [1], [0, 0, 1, 1], [], []>} : vector<16x48xbf16>, vector<48x128xbf16>, vector<16x128xf32> -> vector<16x128xf32>
    %21 = arith.addf %1, %20 : vector<16x128xf32>
    %22 = arith.truncf %21 : vector<16x128xf32> to vector<16x128xbf16>
    %cst_22 = arith.constant dense<0.000000e+00> : vector<16x128xf32>
    %23 = tpu.matmul %22, %9, %cst_22 {dimension_numbers = #tpu.dot_dimension_numbers<[1], [0], [0], [1], [0, 0, 1, 1], [], []>} : vector<16x128xbf16>, vector<128x128xbf16>, vector<16x128xf32> -> vector<16x128xf32>
    %cst_23 = arith.constant 0.000000e+00 : f32
    %24 = vector.broadcast %cst_23 : f32 to vector<16x128xf32>
    %25 = arith.maximumf %23, %24 : vector<16x128xf32>
    %cst_24 = arith.constant dense<0.000000e+00> : vector<128xf32>
    %26 = vector.multi_reduction <add>, %25, %cst_24 [0] : vector<16x128xf32> to vector<128xf32>
    %27 = vector.shape_cast %26 : vector<128xf32> to vector<1x128xf32>
    %cst_25 = arith.constant 6.250000e-02 : f32
    %28 = vector.broadcast %cst_25 : f32 to vector<1x128xf32>
    %29 = arith.mulf %27, %28 : vector<1x128xf32>
    %30 = vector.broadcast %29 : vector<1x128xf32> to vector<16x128xf32>
    %31 = arith.subf %25, %30 : vector<16x128xf32>
    %32 = arith.mulf %31, %31 : vector<16x128xf32>
    %cst_26 = arith.constant dense<0.000000e+00> : vector<128xf32>
    %33 = vector.multi_reduction <add>, %32, %cst_26 [0] : vector<16x128xf32> to vector<128xf32>
    %34 = vector.shape_cast %33 : vector<128xf32> to vector<1x128xf32>
    %cst_27 = arith.constant 6.250000e-02 : f32
    %35 = vector.broadcast %cst_27 : f32 to vector<1x128xf32>
    %36 = arith.mulf %34, %35 : vector<1x128xf32>
    %cst_28 = arith.constant 9.99999974E-6 : f32
    %37 = vector.broadcast %cst_28 : f32 to vector<1x128xf32>
    %38 = arith.addf %36, %37 : vector<1x128xf32>
    %39 = math.rsqrt %38 : vector<1x128xf32>
    %40 = arith.mulf %11, %39 : vector<1x128xf32>
    %41 = vector.broadcast %40 : vector<1x128xf32> to vector<16x128xf32>
    %42 = arith.mulf %31, %41 : vector<16x128xf32>
    %43 = vector.broadcast %13 : vector<1x128xf32> to vector<16x128xf32>
    %44 = arith.addf %42, %43 : vector<16x128xf32>
    %45 = arith.addf %44, %1 : vector<16x128xf32>
    %c1 = arith.constant 1 : index
    %c0_29 = arith.constant 0 : index
    %c0_30 = arith.constant 0 : index
    %46 = vector.load %arg5[%c1, %c0_29, %c0_30] : memref<3x128x128xbf16, #tpu.memory_space<vmem>>, vector<1x128x128xbf16>
    %47 = vector.shape_cast %46 : vector<1x128x128xbf16> to vector<128x128xbf16>
    %c1_31 = arith.constant 1 : index
    %c0_32 = arith.constant 0 : index
    %c0_33 = arith.constant 0 : index
    %48 = vector.load %arg6[%c1_31, %c0_32, %c0_33] : memref<3x1x128xf32, #tpu.memory_space<vmem>>, vector<1x1x128xf32>
    %49 = vector.shape_cast %48 : vector<1x1x128xf32> to vector<1x128xf32>
    %c1_34 = arith.constant 1 : index
    %c0_35 = arith.constant 0 : index
    %c0_36 = arith.constant 0 : index
    %50 = vector.load %arg7[%c1_34, %c0_35, %c0_36] : memref<3x1x128xf32, #tpu.memory_space<vmem>>, vector<1x1x128xf32>
    %51 = vector.shape_cast %50 : vector<1x1x128xf32> to vector<1x128xf32>
    %52 = arith.truncf %45 : vector<16x128xf32> to vector<16x128xbf16>
    %cst_37 = arith.constant dense<0.000000e+00> : vector<48x128xf32>
    %53 = tpu.matmul %3, %52, %cst_37 {dimension_numbers = #tpu.dot_dimension_numbers<[1], [0], [0], [1], [0, 0, 1, 1], [], []>} : vector<48x16xbf16>, vector<16x128xbf16>, vector<48x128xf32> -> vector<48x128xf32>
    %54 = arith.addf %53, %7 : vector<48x128xf32>
    %cst_38 = arith.constant 0.000000e+00 : f32
    %55 = vector.broadcast %cst_38 : f32 to vector<48x128xf32>
    %56 = arith.maximumf %54, %55 : vector<48x128xf32>
    %57 = arith.truncf %56 : vector<48x128xf32> to vector<48x128xbf16>
    %cst_39 = arith.constant dense<0.000000e+00> : vector<16x128xf32>
    %58 = tpu.matmul %5, %57, %cst_39 {dimension_numbers = #tpu.dot_dimension_numbers<[1], [0], [0], [1], [0, 0, 1, 1], [], []>} : vector<16x48xbf16>, vector<48x128xbf16>, vector<16x128xf32> -> vector<16x128xf32>
    %59 = arith.addf %45, %58 : vector<16x128xf32>
    %60 = arith.truncf %59 : vector<16x128xf32> to vector<16x128xbf16>
    %cst_40 = arith.constant dense<0.000000e+00> : vector<16x128xf32>
    %61 = tpu.matmul %60, %47, %cst_40 {dimension_numbers = #tpu.dot_dimension_numbers<[1], [0], [0], [1], [0, 0, 1, 1], [], []>} : vector<16x128xbf16>, vector<128x128xbf16>, vector<16x128xf32> -> vector<16x128xf32>
    %cst_41 = arith.constant 0.000000e+00 : f32
    %62 = vector.broadcast %cst_41 : f32 to vector<16x128xf32>
    %63 = arith.maximumf %61, %62 : vector<16x128xf32>
    %cst_42 = arith.constant dense<0.000000e+00> : vector<128xf32>
    %64 = vector.multi_reduction <add>, %63, %cst_42 [0] : vector<16x128xf32> to vector<128xf32>
    %65 = vector.shape_cast %64 : vector<128xf32> to vector<1x128xf32>
    %cst_43 = arith.constant 6.250000e-02 : f32
    %66 = vector.broadcast %cst_43 : f32 to vector<1x128xf32>
    %67 = arith.mulf %65, %66 : vector<1x128xf32>
    %68 = vector.broadcast %67 : vector<1x128xf32> to vector<16x128xf32>
    %69 = arith.subf %63, %68 : vector<16x128xf32>
    %70 = arith.mulf %69, %69 : vector<16x128xf32>
    %cst_44 = arith.constant dense<0.000000e+00> : vector<128xf32>
    %71 = vector.multi_reduction <add>, %70, %cst_44 [0] : vector<16x128xf32> to vector<128xf32>
    %72 = vector.shape_cast %71 : vector<128xf32> to vector<1x128xf32>
    %cst_45 = arith.constant 6.250000e-02 : f32
    %73 = vector.broadcast %cst_45 : f32 to vector<1x128xf32>
    %74 = arith.mulf %72, %73 : vector<1x128xf32>
    %cst_46 = arith.constant 9.99999974E-6 : f32
    %75 = vector.broadcast %cst_46 : f32 to vector<1x128xf32>
    %76 = arith.addf %74, %75 : vector<1x128xf32>
    %77 = math.rsqrt %76 : vector<1x128xf32>
    %78 = arith.mulf %49, %77 : vector<1x128xf32>
    %79 = vector.broadcast %78 : vector<1x128xf32> to vector<16x128xf32>
    %80 = arith.mulf %69, %79 : vector<16x128xf32>
    %81 = vector.broadcast %51 : vector<1x128xf32> to vector<16x128xf32>
    %82 = arith.addf %80, %81 : vector<16x128xf32>
    %83 = arith.addf %82, %45 : vector<16x128xf32>
    %c2 = arith.constant 2 : index
    %c0_47 = arith.constant 0 : index
    %c0_48 = arith.constant 0 : index
    %84 = vector.load %arg5[%c2, %c0_47, %c0_48] : memref<3x128x128xbf16, #tpu.memory_space<vmem>>, vector<1x128x128xbf16>
    %85 = vector.shape_cast %84 : vector<1x128x128xbf16> to vector<128x128xbf16>
    %c2_49 = arith.constant 2 : index
    %c0_50 = arith.constant 0 : index
    %c0_51 = arith.constant 0 : index
    %86 = vector.load %arg6[%c2_49, %c0_50, %c0_51] : memref<3x1x128xf32, #tpu.memory_space<vmem>>, vector<1x1x128xf32>
    %87 = vector.shape_cast %86 : vector<1x1x128xf32> to vector<1x128xf32>
    %c2_52 = arith.constant 2 : index
    %c0_53 = arith.constant 0 : index
    %c0_54 = arith.constant 0 : index
    %88 = vector.load %arg7[%c2_52, %c0_53, %c0_54] : memref<3x1x128xf32, #tpu.memory_space<vmem>>, vector<1x1x128xf32>
    %89 = vector.shape_cast %88 : vector<1x1x128xf32> to vector<1x128xf32>
    %90 = arith.truncf %83 : vector<16x128xf32> to vector<16x128xbf16>
    %cst_55 = arith.constant dense<0.000000e+00> : vector<48x128xf32>
    %91 = tpu.matmul %3, %90, %cst_55 {dimension_numbers = #tpu.dot_dimension_numbers<[1], [0], [0], [1], [0, 0, 1, 1], [], []>} : vector<48x16xbf16>, vector<16x128xbf16>, vector<48x128xf32> -> vector<48x128xf32>
    %92 = arith.addf %91, %7 : vector<48x128xf32>
    %cst_56 = arith.constant 0.000000e+00 : f32
    %93 = vector.broadcast %cst_56 : f32 to vector<48x128xf32>
    %94 = arith.maximumf %92, %93 : vector<48x128xf32>
    %95 = arith.truncf %94 : vector<48x128xf32> to vector<48x128xbf16>
    %cst_57 = arith.constant dense<0.000000e+00> : vector<16x128xf32>
    %96 = tpu.matmul %5, %95, %cst_57 {dimension_numbers = #tpu.dot_dimension_numbers<[1], [0], [0], [1], [0, 0, 1, 1], [], []>} : vector<16x48xbf16>, vector<48x128xbf16>, vector<16x128xf32> -> vector<16x128xf32>
    %97 = arith.addf %83, %96 : vector<16x128xf32>
    %98 = arith.truncf %97 : vector<16x128xf32> to vector<16x128xbf16>
    %cst_58 = arith.constant dense<0.000000e+00> : vector<16x128xf32>
    %99 = tpu.matmul %98, %85, %cst_58 {dimension_numbers = #tpu.dot_dimension_numbers<[1], [0], [0], [1], [0, 0, 1, 1], [], []>} : vector<16x128xbf16>, vector<128x128xbf16>, vector<16x128xf32> -> vector<16x128xf32>
    %cst_59 = arith.constant 0.000000e+00 : f32
    %100 = vector.broadcast %cst_59 : f32 to vector<16x128xf32>
    %101 = arith.maximumf %99, %100 : vector<16x128xf32>
    %cst_60 = arith.constant dense<0.000000e+00> : vector<128xf32>
    %102 = vector.multi_reduction <add>, %101, %cst_60 [0] : vector<16x128xf32> to vector<128xf32>
    %103 = vector.shape_cast %102 : vector<128xf32> to vector<1x128xf32>
    %cst_61 = arith.constant 6.250000e-02 : f32
    %104 = vector.broadcast %cst_61 : f32 to vector<1x128xf32>
    %105 = arith.mulf %103, %104 : vector<1x128xf32>
    %106 = vector.broadcast %105 : vector<1x128xf32> to vector<16x128xf32>
    %107 = arith.subf %101, %106 : vector<16x128xf32>
    %108 = arith.mulf %107, %107 : vector<16x128xf32>
    %cst_62 = arith.constant dense<0.000000e+00> : vector<128xf32>
    %109 = vector.multi_reduction <add>, %108, %cst_62 [0] : vector<16x128xf32> to vector<128xf32>
    %110 = vector.shape_cast %109 : vector<128xf32> to vector<1x128xf32>
    %cst_63 = arith.constant 6.250000e-02 : f32
    %111 = vector.broadcast %cst_63 : f32 to vector<1x128xf32>
    %112 = arith.mulf %110, %111 : vector<1x128xf32>
    %cst_64 = arith.constant 9.99999974E-6 : f32
    %113 = vector.broadcast %cst_64 : f32 to vector<1x128xf32>
    %114 = arith.addf %112, %113 : vector<1x128xf32>
    %115 = math.rsqrt %114 : vector<1x128xf32>
    %116 = arith.mulf %87, %115 : vector<1x128xf32>
    %117 = vector.broadcast %116 : vector<1x128xf32> to vector<16x128xf32>
    %118 = arith.mulf %107, %117 : vector<16x128xf32>
    %119 = vector.broadcast %89 : vector<1x128xf32> to vector<16x128xf32>
    %120 = arith.addf %118, %119 : vector<16x128xf32>
    %121 = arith.addf %120, %83 : vector<16x128xf32>
    %c0_65 = arith.constant 0 : index
    %c0_66 = arith.constant 0 : index
    %c0_67 = arith.constant 0 : index
    %122 = vector.load %arg8[%c0_65, %c0_66, %c0_67] : memref<1x16x128xf32, #tpu.memory_space<vmem>>, vector<1x16x128xf32>
    %123 = vector.shape_cast %122 : vector<1x16x128xf32> to vector<16x128xf32>
    %124 = vector.shape_cast %121 : vector<16x128xf32> to vector<1x16x128xf32>
    tpu.vector_store %arg8[%c0_65, %c0_66, %c0_67], %124 {strides = array<i32>} : memref<1x16x128xf32, #tpu.memory_space<vmem>>, vector<1x16x128xf32>,
    return
  }
  func.func @transform_0(%arg0: i32) -> (i32, i32, i32) {
    %c0_i32 = arith.constant 0 : i32
    %c0_i32_0 = arith.constant 0 : i32
    %c0_i32_1 = arith.constant 0 : i32
    return %arg0, %c0_i32, %c0_i32_0 : i32, i32, i32
  }
  func.func @transform_1(%arg0: i32) -> (i32, i32, i32) {
    %c0_i32 = arith.constant 0 : i32
    %c0_i32_0 = arith.constant 0 : i32
    %c0_i32_1 = arith.constant 0 : i32
    return %arg0, %c0_i32, %c0_i32_0 : i32, i32, i32
  }
  func.func @transform_2(%arg0: i32) -> (i32, i32, i32) {
    %c0_i32 = arith.constant 0 : i32
    %c0_i32_0 = arith.constant 0 : i32
    %c0_i32_1 = arith.constant 0 : i32
    return %arg0, %c0_i32, %c0_i32_0 : i32, i32, i32
  }
  func.func @transform_3(%arg0: i32) -> (i32, i32, i32) {
    %c0_i32 = arith.constant 0 : i32
    %c0_i32_0 = arith.constant 0 : i32
    %c0_i32_1 = arith.constant 0 : i32
    return %arg0, %c0_i32, %c0_i32_0 : i32, i32, i32
  }
  func.func @transform_4(%arg0: i32) -> (i32, i32, i32) {
    %c0_i32 = arith.constant 0 : i32
    %c0_i32_0 = arith.constant 0 : i32
    %c0_i32_1 = arith.constant 0 : i32
    %c0_i32_2 = arith.constant 0 : i32
    return %c0_i32, %c0_i32_0, %c0_i32_1 : i32, i32, i32
  }
  func.func @transform_5(%arg0: i32) -> (i32, i32, i32) {
    %c0_i32 = arith.constant 0 : i32
    %c0_i32_0 = arith.constant 0 : i32
    %c0_i32_1 = arith.constant 0 : i32
    %c0_i32_2 = arith.constant 0 : i32
    return %c0_i32, %c0_i32_0, %c0_i32_1 : i32, i32, i32
  }
  func.func @transform_6(%arg0: i32) -> (i32, i32, i32) {
    %c0_i32 = arith.constant 0 : i32
    %c0_i32_0 = arith.constant 0 : i32
    %c0_i32_1 = arith.constant 0 : i32
    %c0_i32_2 = arith.constant 0 : i32
    return %c0_i32, %c0_i32_0, %c0_i32_1 : i32, i32, i32
  }
  func.func @transform_7(%arg0: i32) -> (i32, i32, i32) {
    %c0_i32 = arith.constant 0 : i32
    %c0_i32_0 = arith.constant 0 : i32
    %c0_i32_1 = arith.constant 0 : i32
    return %arg0, %c0_i32, %c0_i32_0 : i32, i32, i32
  }
}

</mosaic_0001>

<bundles_post_ra>
// kernel: gnn_forward.1
= control target key start
LH: loop header
LB: loop body
LE: loop exit
PB: predicated region body
PF: predicated region fallthrough
CT: control target
= control target key end

     0   :  { %12 = vsyncpa [#allocation3], 0  ;;  %s2134_s0 = inlined_call_operand.vmem [shape: bf16[4,48,16], index: 0, kind: input, shape index: {}]   ;;  %s2135_s1 = inlined_call_operand.vmem [shape: bf16[4,16,48], index: 1, kind: input, shape index: {}]   ;;  %s2136_s2 = inlined_call_operand.vmem [shape: f32[4,48,128], index: 2, kind: input, shape index: {}]   ;;  %s2137_s3 = inlined_call_operand.vmem [shape: f32[4,16,128], index: 3, kind: input, shape index: {}]   ;;  %s2138_s4 = inlined_call_operand.vmem [shape: bf16[3,128,128], index: 4, kind: input, shape index: {}]   ;;  %s2139_s5 = inlined_call_operand.vmem [shape: f32[3,1,128], index: 5, kind: input, shape index: {}]   ;;  %s2140_s6 = inlined_call_operand.vmem [shape: f32[3,1,128], index: 6, kind: input, shape index: {}]   ;;  %s2141_s7 = inlined_call_operand.hbm [shape: f32[4,16,128], index: 7, kind: output, shape index: {}]  }
   0x1   :  { %14 = vsyncpa [#allocation3 + $0x1], 0  ;;  %s1760_s24 = smov 0   ;;  %s1762_s25 = smov 0  }
   0x2   :  { %s1764_s26 = smov 0   ;;  %s1766_s27 = smov 0  }
   0x3 LB: > { %s1781_s28 = sadd.s32 4294967295, %s1713_s27   ;;  %s1291_s29 = sadd.s32 4294967294, %s1713_s27   ;;  %s1713_s27 = sphi %s1766_s27, %s2147_s27   ;;  %s1709_s26 = sphi %s1764_s26, %s2146_s26   ;;  %s1705_s25 = sphi %s1762_s25, %s2145_s25   ;;  %s1701_s24 = sphi %s1760_s24, %s2144_s24  }
   0x4   : > { %s1785_s30 = sadd.s32 1, %s1713_s27   ;;  %s194_s8 = sadd.s32 1, %s1709_s26 }
   0x5   : > { %s191_s9 = ssub.s32 %s1713_s27, %s1785_s30  ;;  %p204_p0 = scmp.ne.s32.totalorder %s1709_s26, %s1705_s25 }
   0x6   : > { %p192_p1 = scmp.eq.s32.totalorder %s191_s9, 0  ;;  %p205_p2 = scmp.eq.s32.totalorder %s1781_s28, 3 }
   0x7   : > { %p210_p3 = scmp.ne.s32.totalorder %s1705_s25, %s1701_s24  ;;  %p211_p4 = scmp.eq.s32.totalorder %s1291_s29, 3 }
   0x8   : > { %s1796_s10 = scalar_select %p192_p1, %s1709_s26, %s194_s8  }
   0x9   : > { %p1798_p5 = por %p205_p2, %p204_p0  ;;  %p1802_p6 = por %p211_p4, %p210_p3 }
   0xa   : > { %p1294_p7 = scmp.ge.s32.totalorder %s1713_s27, 1  ;;  %p270_p8 = scmp.lt.s32.totalorder %s1713_s27, 5 }
   0xc   : > { %p271_p9 = pnand %p1294_p7, %p270_p8 }
   0xd   : > { %p317_p10 = scmp.lt.s32.totalorder (!%p271_p9), %s1781_s28, 3  ;;  %v1715_v0 = vmov (!%p271_p9), 0.0   ;;  %vm1716_vm0 = vmmov (!%p271_p9), 0   ;;  %vm388_vm1 = vcmask (!%p271_p9), 130048   ;;  %v1621_v7 = vld [vmem:[%s2138_s4] sm:$0xff] (!%p271_p9)   ;;  %v1622_v8 = vld [vmem:[%s2138_s4 + $0x8] sm:$0xff] (!%p271_p9)  }
   0xe   : > { %274 = sbr.rel (%p271_p9) target bundleno = 2252 (0x8cc), region = 48  ;;  %1440 = vmatprep.subr.bf16.mxu1 (!%p271_p9), %v1715_v0  ;;  %1442 = vmatprep.mubr.msk.bf16.mxu1 (!%p271_p9), %vm1716_vm0, %v1715_v0  ;;  %v1623_v9 = vld [vmem:[%s2138_s4 + $0x10] sm:$0xff] (!%p271_p9)   ;;  %v1624_v10 = vld [vmem:[%s2138_s4 + $0x18] sm:$0xff] (!%p271_p9)   ;;  %v1625_v11 = vld [vmem:[%s2138_s4 + $0x20] sm:$0xff] (!%p271_p9)   ;;  %vm469_vm2 = vcmask (!%p271_p9), 392192   ;;  %s1388_s23 = sshll.u32 (!%p271_p9), %s1781_s28, 8 }
   0xf   : > { %1464 = vmatprep.subr.bf16.mxu0 (!%p271_p9), %v1715_v0  ;;  %1480 = vmatprep.mubr.msk.bf16.mxu0 (!%p271_p9), %vm1716_vm0, %v1715_v0  ;;  %v1626_v12 = vld [vmem:[%s2138_s4 + $0x28] sm:$0xff] (!%p271_p9)   ;;  %v1627_v47 = vld [vmem:[%s2138_s4 + $0x30] sm:$0xff] (!%p271_p9)   ;;  %v1628_v48 = vld [vmem:[%s2138_s4 + $0x38] sm:$0xff] (!%p271_p9)   ;;  %s1717_s17 = smov (!%p271_p9), [#allocation2]  }
  0x10   : > { %1465 = vmatpush3.bf16.msra.mxu0 (!%p271_p9), %v1621_v7 }
  0x11   : > { %1466 = vmatprep.subr.bf16.mxu0 (!%p271_p9), %v1715_v0 }
  0x14   : > { %1467 = vmatpush3.bf16.msra.mxu0 (!%p271_p9), %v1622_v8 }
  0x15   : > { %s1813_s13 = scalar_select %p317_p10, %s1781_s28, 3  ;;  %1468 = vmatprep.subr.bf16.mxu0 %v1715_v0 }
  0x17   : > { %s1387_s14 = sshll.u32 %s1813_s13, 4  ;;  %s1572_s15 = smul.u32 24, %s1813_s13 }
  0x18   : > { %s336_s18 = scalar_lea.vmem %s2137_s3, %s1387_s14  ;;  %s1386_s22 = sshll.u32 %s1813_s13, 3  ;;  %1469 = vmatpush3.bf16.msra.mxu0 %v1623_v9 }
  0x19   : > { %v1823_v1 = vld [vmem:[%s336_s18] sm:$0xff]  ;;  %v1825_v2 = vld [vmem:[%s336_s18 + $0x8] sm:$0xff]  ;;  %s321_s21 = scalar_lea.vmem %s2134_s0, %s1572_s15  ;;  %s1855_s8 = scalar_lea.vmem %s2135_s1, %s1386_s22  ;;  %1470 = vmatprep.subr.bf16.mxu0 %v1715_v0 }
  0x1a   : > { %v372_v3 = vpack.c.bf16 %v1825_v2, %v1823_v1  ;;  %v1832_v4 = vld [vmem:[%s321_s21] sm:$0xff]   ;;  %v1839_v5 = vld [vmem:[%s321_s21 + $0x8] sm:$0xff]   ;;  %v1845_v6 = vld [vmem:[%s321_s21 + $0x10] sm:$0xff]   ;;  %s1573_s9 = smul.u32 48, %s1813_s13  ;;  %s314_s18 = sand.u32 1, %s1705_s25  }
  0x1b   : > { %v1906_v46 = vld [vmem:[%s1855_s8] sm:$0xff]   ;;  %s1295_s20 = sshll.u32 %s314_s18, 4  ;;  %s2093_s28 = scalar_lea.sflag [#allocation3], %s314_s18 }
  0x1c   : > { %1441 = vmatpush3.bf16.msra.mxu1 %v372_v3  ;;  %1471 = vmatpush3.bf16.msra.mxu0 %v1624_v10  ;;  %s331_s16 = scalar_lea.vmem %s2136_s2, %s1573_s9  ;;  %s316_s29 = scalar_lea.vmem [#allocation2], %s1295_s20 }
  0x1d   : > { %1454 = vmatprep.subr.bf16.mxu1 %v1715_v0  ;;  %1472 = vmatprep.subr.bf16.mxu0 %v1715_v0  ;;  %v1885_v13 = vld [vmem:[%s331_s16] sm:$0xff]  ;;  %v1887_v15 = vld [vmem:[%s331_s16 + $0x8] sm:$0xff]  ;;  %v1891_v23 = vld [vmem:[%s331_s16 + $0x10] sm:$0xff]  ;;  %s1193_s9 = sshll.u32 %s316_s29, 4  ;;  %s1655_s8 = sshll.u32 %s1717_s17, 4  ;;  %s2089_s9 = int_to_ptr.vmem [resolvable:$true] %s1193_s9  ;;  %s1656_s8 = int_to_ptr.vmem [resolvable:$false] %s1655_s8 }
  0x1e   : > { %v1893_v26 = vld [vmem:[%s331_s16 + $0x18] sm:$0xff]  ;;  %v1898_v34 = vld [vmem:[%s331_s16 + $0x20] sm:$0xff]  ;;  %v1900_v37 = vld [vmem:[%s331_s16 + $0x28] sm:$0xff]  ;;  %s2087_s16 = scalar_lea.hbm %s2141_s7, %s1388_s23  ;;  %s1651_s13 = scalar_lea.vmem %s2089_s9, 256 }
  0x1f   : > { %1443 = vmatmul.mubr.msk.bf16.vlgmr.msra.gmra.mrb[0].mxu1 %vm388_vm1, %v1832_v4  ;;  %p1652_p11 = scmp.ne.s32.totalorder %s2089_s9, %s1651_s13  ;;  %s1657_s19 = scalar_lea.vmem %s1656_s8, 512 }
  0x20   : > { %1446 = vmatprep.mubr.msk.bf16.mxu1 %vm1716_vm0, %v1715_v0  ;;  %1473 = vmatpush3.bf16.msra.mxu0 %v1625_v11  ;;  %p1658_p0 = scmp.lt.s32.totalorder %s2089_s9, %s1656_s8  ;;  %p1659_p1 = scmp.lt.s32.totalorder %s1657_s19, %s1651_s13 }
  0x21   : > { %1474 = vmatprep.subr.bf16.mxu0 %v1715_v0  ;;  %p1653_p12 = pnand %p1652_p11, %p1798_p5 }
  0x22   : > { %p1660_p2 = por %p1659_p1, %p1658_p0 }
  0x23   : > { %p1654_p13 = pneg %p1653_p12 }
  0x24   : > { %1475 = vmatpush3.bf16.msra.mxu0 %v1626_v12 }
  0x25   : > { %1476 = vmatprep.subr.bf16.mxu0 %v1715_v0  ;;  %p1661_p3 = pnand %p1660_p2, %p1654_p13 }
  0x27   : > { %1447 = vmatmul.mubr.msk.bf16.gmra.mrb[4].mxu1 %vm388_vm1, %v1839_v5 }
  0x28   : > { %1450 = vmatprep.mubr.msk.bf16.mxu1 %vm1716_vm0, %v1715_v0  ;;  %1477 = vmatpush3.bf16.msra.mxu0 %v1627_v47  ;;  %v1631_v47 = vld [vmem:[%s2138_s4 + $0x50] sm:$0xff]  }
  0x29   : > { %1478 = vmatprep.subr.bf16.mxu0 %v1715_v0 }
  0x2c   : > { %1479 = vmatpush3.bf16.msra.mxu0 %v1628_v48  ;;  %v1632_v48 = vld [vmem:[%s2138_s4 + $0x58] sm:$0xff]  }
  0x2d   : > { %1508 = vmatprep.subr.bf16.mxu0 %v1715_v0 }
  0x2f   : > { %1451 = vmatmul.mubr.msk.bf16.gmra.mrb[8].mxu1 %vm388_vm1, %v1845_v6 }
  0x30   : > { %1460 = vmatprep.mubr.msk.bf16.mxu1 %vm1716_vm0, %v1715_v0 }
  0xf2   : > { %v432_v14 = vpop.f32.mrb[0].mxu1 }
  0xf3   : > { %v433_v16 = vadd.f32 %v432_v14, %v1885_v13  ;;  %v1444_v17 = vpop.f32.mrb[1].mxu1 }
  0xf4   : > { %v435_v18 = vpop.f32.mrb[2].mxu1 }
  0xf5   : > { %v436_v19 = vadd.f32 %v435_v18, %v1887_v15  ;;  %v1445_v20 = vpop.f32.mrb[3].mxu1  ;;  %v455_v21 = vmax.f32 %v433_v16, 0.0 }
  0xf7   : > { %v456_v22 = vmax.f32 %v436_v19, 0.0 }
  0xf9   : > { %v461_v24 = vpack.c.bf16 %v456_v22, %v455_v21 }
  0xfa   : > { %v440_v25 = vpop.f32.mrb[4].mxu1 }
  0xfb   : > { %v441_v27 = vadd.f32 %v440_v25, %v1891_v23  ;;  %v1448_v28 = vpop.f32.mrb[5].mxu1  ;;  %1455 = vmatpush3.bf16.msra.mxu1 %v461_v24 }
  0xfc   : > { %v443_v29 = vpop.f32.mrb[6].mxu1  ;;  %1456 = vmatprep.subr.bf16.mxu1 %v1715_v0 }
  0xfd   : > { %v444_v30 = vadd.f32 %v443_v29, %v1893_v26  ;;  %v1449_v31 = vpop.f32.mrb[7].mxu1  ;;  %v457_v32 = vmax.f32 %v441_v27, 0.0  ;;  %v632_v29 = vlaneseq }
  0xfe   : > { %v370_v31 = vld [vmem:[%s2139_s5] sm:$0x1] }
  0xff   : > { %v458_v33 = vmax.f32 %v444_v30, 0.0  ;;  %v633_v30 = vshrl.u32 %v632_v29, 7 }
 0x101   : > { %v462_v35 = vpack.c.bf16 %v458_v33, %v457_v32  ;;  %v1928_v32 = vsub.s32 0, %v633_v30 }
 0x102   : > { %v448_v36 = vpop.f32.mrb[8].mxu1 }
 0x103   : > { %v449_v38 = vadd.f32 %v448_v36, %v1898_v34  ;;  %v1452_v39 = vpop.f32.mrb[9].mxu1  ;;  %1457 = vmatpush3.bf16.msra.mxu1 %v462_v35 }
 0x104   : > { %v451_v40 = vpop.f32.mrb[10].mxu1  ;;  %1458 = vmatprep.subr.bf16.mxu1 %v1715_v0 }
 0x105   : > { %v452_v41 = vadd.f32 %v451_v40, %v1900_v37  ;;  %v1453_v42 = vpop.f32.mrb[11].mxu1  ;;  %v459_v43 = vmax.f32 %v449_v38, 0.0  ;;  %v1318_v38 = vld [vmem:[%s2140_s6] ss:$0 sm:$0xff] }
 0x107   : > { %v460_v44 = vmax.f32 %v452_v41, 0.0 }
 0x109   : > { %v463_v45 = vpack.c.bf16 %v460_v44, %v459_v43 }
 0x10b   : > { %1459 = vmatpush3.bf16.msra.mxu1 %v463_v45 }
 0x10c   : > { %1484 = vmatprep.subr.bf16.mxu1 %v1715_v0 }
 0x10e   : > { %1461 = vmatmul.mubr.msk.bf16.vlgmr.msra.gmra.mrb[12].mxu1 %vm469_vm2, %v1906_v46 }
 0x10f   : > { %1486 = vmatprep.mubr.msk.bf16.mxu1 %vm1716_vm0, %v1715_v0 }
 0x1e1   : > { %v507_v49 = vpop.f32.mrb[12].mxu1 }
 0x1e2   : > { %v1462_v50 = vpop.f32.mrb[13].mxu1  ;;  %v514_v52 = vadd.f32 %v507_v49, %v1823_v1  ;;  %v1633_v49 = vld [vmem:[%s2138_s4 + $0x60] sm:$0xff]  }
 0x1e3   : > { %v510_v51 = vpop.f32.mrb[14].mxu1  ;;  %v1634_v50 = vld [vmem:[%s2138_s4 + $0x68] sm:$0xff]  }
 0x1e4   : > { %v515_v53 = vadd.f32 %v510_v51, %v1825_v2  ;;  %v1463_v54 = vpop.f32.mrb[15].mxu1 }
 0x1e6   : > { %v516_v55 = vpack.c.bf16 %v515_v53, %v514_v52 }
 0x1e8   : > { %1481 = vmatmul.mubr.bf16.vlgmr.msra.gmra.mrb[0].mxu0 %v516_v55 }
 0x1e9   : > { %1524 = vmatprep.mubr.msk.bf16.mxu0 %vm1716_vm0, %v1715_v0 }
 0x2bb   : > { %v599_v56 = vpop.f32.mrb[0].mxu0 }
 0x2bc   : > { %v1482_v57 = vpop.f32.mrb[1].mxu0  ;;  %v606_v59 = vmax.f32 %v599_v56, 0.0 }
 0x2bd   : > { %v602_v58 = vpop.f32.mrb[2].mxu0 }
 0x2be   : > { %v607_v60 = vmax.f32 %v602_v58, 0.0  ;;  %v1483_v61 = vpop.f32.mrb[3].mxu0 }
 0x2c0   : > { %v608_v62 = vadd.f32 %v607_v60, %v606_v59 }
 0x2c2   : > { %v609_v63 = vrot.slane %v608_v62, 4 }
 0x2c4   : > { %v610_v3 = vadd.f32 %v609_v63, %v608_v62 }
 0x2c6   : > { %v611_v7 = vrot.slane %v610_v3, 2 }
 0x2c8   : > { %v612_v8 = vadd.f32 %v611_v7, %v610_v3 }
 0x2ca   : > { %v613_v9 = vrot.slane %v612_v8, 1 }
 0x2cc   : > { %v614_v10 = vadd.f32 %v613_v9, %v612_v8 }
 0x2ce   : > { %v615_v11 = vmul.f32 0.0625, %v614_v10 }
 0x2d0   : > { %v616_v12 = vsub.f32 %v606_v59, %v615_v11  ;;  %v617_v14 = vsub.f32 %v607_v60, %v615_v11 }
 0x2d2   : > { %v618_v16 = vmul.f32 %v616_v12, %v616_v12  ;;  %v619_v17 = vmul.f32 %v617_v14, %v617_v14 }
 0x2d4   : > { %v620_v18 = vadd.f32 %v619_v17, %v618_v16 }
 0x2d6   : > { %v621_v19 = vrot.slane %v620_v18, 4 }
 0x2d8   : > { %v622_v20 = vadd.f32 %v621_v19, %v620_v18 }
 0x2da   : > { %v623_v21 = vrot.slane %v622_v20, 2 }
 0x2dc   : > { %v624_v22 = vadd.f32 %v623_v21, %v622_v20 }
 0x2de   : > { %v625_v24 = vrot.slane %v624_v22, 1 }
 0x2e0   : > { %v626_v25 = vadd.f32 %v625_v24, %v624_v22  ;;  %v1635_v22 = vld [vmem:[%s2138_s4 + $0x70] sm:$0xff]   ;;  %v1636_v24 = vld [vmem:[%s2138_s4 + $0x78] sm:$0xff]  }
 0x2e2   : > { %v627_v27 = vmul.f32 0.0625, %v626_v25 }
 0x2e4   : > { %v628_v28 = vadd.f32 1e-05, %v627_v27 }
 0x2e6   : > { %1645 = vrsqrt.f32 %v628_v28 }
 0x2f0   : > { %v1646_v33 = vpop.eup %1645 }
 0x2f1   : > { %v630_v35 = vmul.f32 %v1646_v33, %v370_v31 }
 0x2f3   : > { %v635_v36 = vrot.slane %v630_v35, %v1928_v32 }
 0x2f5   : > { %v637_v39 = vmul.f32 %v635_v36, %v616_v12  ;;  %v638_v40 = vmul.f32 %v635_v36, %v617_v14 }
 0x2f7   : > { %v645_v41 = vadd.f32 %v1318_v38, %v637_v39  ;;  %v646_v42 = vadd.f32 %v1318_v38, %v638_v40 }
 0x2f9   : > { %v1935_v43 = vadd.f32 %v645_v41, %v1823_v1  ;;  %v1938_v44 = vadd.f32 %v646_v42, %v1825_v2  ;;  %v1629_v1 = vld [vmem:[%s2138_s4 + $0x40] sm:$0xff]   ;;  %v1630_v2 = vld [vmem:[%s2138_s4 + $0x48] sm:$0xff]  }
 0x2fa   : > { %1509 = vmatpush3.bf16.msra.mxu0 %v1629_v1 }
 0x2fb   : > { %v670_v45 = vpack.c.bf16 %v1938_v44, %v1935_v43  ;;  %1510 = vmatprep.subr.bf16.mxu0 %v1715_v0 }
 0x2fd   : > { %1485 = vmatpush3.bf16.msra.mxu1 %v670_v45 }
 0x2fe   : > { %1498 = vmatprep.subr.bf16.mxu1 %v1715_v0  ;;  %1511 = vmatpush3.bf16.msra.mxu0 %v1630_v2 }
 0x2ff   : > { %1512 = vmatprep.subr.bf16.mxu0 %v1715_v0 }
 0x300   : > { %1487 = vmatmul.mubr.msk.bf16.vlgmr.msra.gmra.mrb[16].mxu1 %vm388_vm1, %v1832_v4 }
 0x301   : > { %1490 = vmatprep.mubr.msk.bf16.mxu1 %vm1716_vm0, %v1715_v0 }
 0x302   : > { %1513 = vmatpush3.bf16.msra.mxu0 %v1631_v47 }
 0x303   : > { %1514 = vmatprep.subr.bf16.mxu0 %v1715_v0 }
 0x306   : > { %1515 = vmatpush3.bf16.msra.mxu0 %v1632_v48 }
 0x307   : > { %1516 = vmatprep.subr.bf16.mxu0 %v1715_v0 }
 0x308   : > { %1491 = vmatmul.mubr.msk.bf16.gmra.mrb[20].mxu1 %vm388_vm1, %v1839_v5 }
 0x309   : > { %1494 = vmatprep.mubr.msk.bf16.mxu1 %vm1716_vm0, %v1715_v0 }
 0x30a   : > { %1517 = vmatpush3.bf16.msra.mxu0 %v1633_v49 }
 0x30b   : > { %1518 = vmatprep.subr.bf16.mxu0 %v1715_v0 }
 0x30e   : > { %1519 = vmatpush3.bf16.msra.mxu0 %v1634_v50 }
 0x30f   : > { %1520 = vmatprep.subr.bf16.mxu0 %v1715_v0 }
 0x310   : > { %1495 = vmatmul.mubr.msk.bf16.gmra.mrb[24].mxu1 %vm388_vm1, %v1845_v6 }
 0x311   : > { %1504 = vmatprep.mubr.msk.bf16.mxu1 %vm1716_vm0, %v1715_v0 }
 0x312   : > { %1521 = vmatpush3.bf16.msra.mxu0 %v1635_v22 }
 0x313   : > { %1522 = vmatprep.subr.bf16.mxu0 %v1715_v0 }
 0x316   : > { %1523 = vmatpush3.bf16.msra.mxu0 %v1636_v24 }
 0x317   : > { %1552 = vmatprep.subr.bf16.mxu0 %v1715_v0 }
 0x3d3   : > { %v705_v51 = vpop.f32.mrb[16].mxu1 }
 0x3d4   : > { %v706_v52 = vadd.f32 %v705_v51, %v1885_v13  ;;  %v1488_v53 = vpop.f32.mrb[17].mxu1 }
 0x3d5   : > { %v708_v54 = vpop.f32.mrb[18].mxu1 }
 0x3d6   : > { %v709_v55 = vadd.f32 %v708_v54, %v1887_v15  ;;  %v1489_v56 = vpop.f32.mrb[19].mxu1  ;;  %v728_v57 = vmax.f32 %v706_v52, 0.0 }
 0x3d8   : > { %v729_v58 = vmax.f32 %v709_v55, 0.0 }
 0x3da   : > { %v734_v59 = vpack.c.bf16 %v729_v58, %v728_v57 }
 0x3db   : > { %v713_v60 = vpop.f32.mrb[20].mxu1 }
 0x3dc   : > { %v714_v61 = vadd.f32 %v713_v60, %v1891_v23  ;;  %v1492_v62 = vpop.f32.mrb[21].mxu1  ;;  %1499 = vmatpush3.bf16.msra.mxu1 %v734_v59 }
 0x3dd   : > { %v716_v63 = vpop.f32.mrb[22].mxu1  ;;  %1500 = vmatprep.subr.bf16.mxu1 %v1715_v0 }
 0x3de   : > { %v717_v3 = vadd.f32 %v716_v63, %v1893_v26  ;;  %v1493_v7 = vpop.f32.mrb[23].mxu1  ;;  %v730_v8 = vmax.f32 %v714_v61, 0.0 }
 0x3e0   : > { %v731_v9 = vmax.f32 %v717_v3, 0.0  ;;  %v1335_v3 = vld [vmem:[%s2139_s5 + $0x1] sm:$0x1] }
 0x3e2   : > { %v735_v10 = vpack.c.bf16 %v731_v9, %v730_v8 }
 0x3e3   : > { %v721_v11 = vpop.f32.mrb[24].mxu1 }
 0x3e4   : > { %v722_v12 = vadd.f32 %v721_v11, %v1898_v34  ;;  %v1496_v14 = vpop.f32.mrb[25].mxu1  ;;  %1501 = vmatpush3.bf16.msra.mxu1 %v735_v10  ;;  %v1349_v10 = vld [vmem:[%s2140_s6 + $0x1] ss:$0 sm:$0xff] }
 0x3e5   : > { %v724_v16 = vpop.f32.mrb[26].mxu1  ;;  %1502 = vmatprep.subr.bf16.mxu1 %v1715_v0 }
 0x3e6   : > { %v725_v17 = vadd.f32 %v724_v16, %v1900_v37  ;;  %v1497_v18 = vpop.f32.mrb[27].mxu1  ;;  %v732_v19 = vmax.f32 %v722_v12, 0.0 }
 0x3e8   : > { %v733_v20 = vmax.f32 %v725_v17, 0.0 }
 0x3ea   : > { %v736_v21 = vpack.c.bf16 %v733_v20, %v732_v19  ;;  %v1642_v20 = vld [vmem:[%s2138_s4 + $0xa8] sm:$0xff]  }
 0x3ec   : > { %1503 = vmatpush3.bf16.msra.mxu1 %v736_v21 }
 0x3ed   : > { %1528 = vmatprep.subr.bf16.mxu1 %v1715_v0 }
 0x3ef   : > { %1505 = vmatmul.mubr.msk.bf16.vlgmr.msra.gmra.mrb[28].mxu1 %vm469_vm2, %v1906_v46 }
 0x3f0   : > { %1530 = vmatprep.mubr.msk.bf16.mxu1 %vm1716_vm0, %v1715_v0 }
 0x4c2   : > { %v771_v25 = vpop.f32.mrb[28].mxu1 }
 0x4c3   : > { %v1506_v27 = vpop.f32.mrb[29].mxu1  ;;  %v778_v29 = vadd.f32 %v771_v25, %v1935_v43 }
 0x4c4   : > { %v774_v28 = vpop.f32.mrb[30].mxu1 }
 0x4c5   : > { %v779_v30 = vadd.f32 %v774_v28, %v1938_v44  ;;  %v1507_v31 = vpop.f32.mrb[31].mxu1 }
 0x4c7   : > { %v780_v33 = vpack.c.bf16 %v779_v30, %v778_v29 }
 0x4c9   : > { %1525 = vmatmul.mubr.bf16.vlgmr.msra.gmra.mrb[4].mxu0 %v780_v33 }
 0x4ca   : > { %1568 = vmatprep.mubr.msk.bf16.mxu0 %vm1716_vm0, %v1715_v0 }
 0x59c   : > { %v863_v35 = vpop.f32.mrb[4].mxu0 }
 0x59d   : > { %v1526_v36 = vpop.f32.mrb[5].mxu0  ;;  %v870_v39 = vmax.f32 %v863_v35, 0.0 }
 0x59e   : > { %v866_v38 = vpop.f32.mrb[6].mxu0 }
 0x59f   : > { %v871_v40 = vmax.f32 %v866_v38, 0.0  ;;  %v1527_v41 = vpop.f32.mrb[7].mxu0 }
 0x5a1   : > { %v872_v42 = vadd.f32 %v871_v40, %v870_v39 }
 0x5a3   : > { %v873_v45 = vrot.slane %v872_v42, 4 }
 0x5a5   : > { %v874_v1 = vadd.f32 %v873_v45, %v872_v42 }
 0x5a7   : > { %v875_v2 = vrot.slane %v874_v1, 2 }
 0x5a9   : > { %v876_v47 = vadd.f32 %v875_v2, %v874_v1 }
 0x5ab   : > { %v877_v48 = vrot.slane %v876_v47, 1 }
 0x5ad   : > { %v878_v49 = vadd.f32 %v877_v48, %v876_v47 }
 0x5af   : > { %v879_v50 = vmul.f32 0.0625, %v878_v49 }
 0x5b1   : > { %v880_v51 = vsub.f32 %v870_v39, %v879_v50  ;;  %v881_v52 = vsub.f32 %v871_v40, %v879_v50 }
 0x5b3   : > { %v882_v53 = vmul.f32 %v880_v51, %v880_v51  ;;  %v883_v54 = vmul.f32 %v881_v52, %v881_v52 }
 0x5b5   : > { %v884_v55 = vadd.f32 %v883_v54, %v882_v53 }
 0x5b7   : > { %v885_v56 = vrot.slane %v884_v55, 4 }
 0x5b9   : > { %v886_v57 = vadd.f32 %v885_v56, %v884_v55 }
 0x5bb   : > { %v887_v58 = vrot.slane %v886_v57, 2 }
 0x5bd   : > { %v888_v59 = vadd.f32 %v887_v58, %v886_v57 }
 0x5bf   : > { %v889_v60 = vrot.slane %v888_v59, 1 }
 0x5c1   : > { %v890_v61 = vadd.f32 %v889_v60, %v888_v59 }
 0x5c3   : > { %v891_v62 = vmul.f32 0.0625, %v890_v61 }
 0x5c5   : > { %v892_v63 = vadd.f32 1e-05, %v891_v62 }
 0x5c7   : > { %1647 = vrsqrt.f32 %v892_v63 }
 0x5d1   : > { %v1648_v7 = vpop.eup %1647 }
 0x5d2   : > { %v894_v8 = vmul.f32 %v1648_v7, %v1335_v3 }
 0x5d4   : > { %v899_v9 = vrot.slane %v894_v8, %v1928_v32 }
 0x5d6   : > { %v901_v11 = vmul.f32 %v899_v9, %v880_v51  ;;  %v902_v12 = vmul.f32 %v899_v9, %v881_v52 }
 0x5d8   : > { %v909_v14 = vadd.f32 %v1349_v10, %v901_v11  ;;  %v910_v16 = vadd.f32 %v1349_v10, %v902_v12 }
 0x5da   : > { %v2012_v17 = vadd.f32 %v909_v14, %v1935_v43  ;;  %v2015_v18 = vadd.f32 %v910_v16, %v1938_v44  ;;  %v1637_v43 = vld [vmem:[%s2138_s4 + $0x80] sm:$0xff]  }
 0x5db   : > { %1553 = vmatpush3.bf16.msra.mxu0 %v1637_v43  ;;  %v1641_v44 = vld [vmem:[%s2138_s4 + $0xa0] sm:$0xff]  }
 0x5dc   : > { %v934_v19 = vpack.c.bf16 %v2015_v18, %v2012_v17  ;;  %1554 = vmatprep.subr.bf16.mxu0 %v1715_v0 }
 0x5de   : > { %1529 = vmatpush3.bf16.msra.mxu1 %v934_v19 }
 0x5df   : > { %1542 = vmatprep.subr.bf16.mxu1 %v1715_v0 }
 0x5e1   : > { %1531 = vmatmul.mubr.msk.bf16.vlgmr.msra.gmra.mrb[32].mxu1 %vm388_vm1, %v1832_v4  ;;  %v1638_v4 = vld [vmem:[%s2138_s4 + $0x88] sm:$0xff]  }
 0x5e2   : > { %1534 = vmatprep.mubr.msk.bf16.mxu1 %vm1716_vm0, %v1715_v0  ;;  %1555 = vmatpush3.bf16.msra.mxu0 %v1638_v4 }
 0x5e3   : > { %1556 = vmatprep.subr.bf16.mxu0 %v1715_v0 }
 0x5e9   : > { %1535 = vmatmul.mubr.msk.bf16.gmra.mrb[36].mxu1 %vm388_vm1, %v1839_v5  ;;  %v1639_v5 = vld [vmem:[%s2138_s4 + $0x90] sm:$0xff]  }
 0x5ea   : > { %1538 = vmatprep.mubr.msk.bf16.mxu1 %vm1716_vm0, %v1715_v0  ;;  %1557 = vmatpush3.bf16.msra.mxu0 %v1639_v5 }
 0x5eb   : > { %1558 = vmatprep.subr.bf16.mxu0 %v1715_v0 }
 0x5f1   : > { %1539 = vmatmul.mubr.msk.bf16.gmra.mrb[40].mxu1 %vm388_vm1, %v1845_v6  ;;  %v1640_v6 = vld [vmem:[%s2138_s4 + $0x98] sm:$0xff]  }
 0x5f2   : > { %1548 = vmatprep.mubr.msk.bf16.mxu1 %vm1716_vm0, %v1715_v0  ;;  %1559 = vmatpush3.bf16.msra.mxu0 %v1640_v6 }
 0x5f3   : > { %1560 = vmatprep.subr.bf16.mxu0 %v1715_v0 }
 0x5f6   : > { %1561 = vmatpush3.bf16.msra.mxu0 %v1641_v44 }
 0x5f7   : > { %1562 = vmatprep.subr.bf16.mxu0 %v1715_v0 }
 0x5fa   : > { %1563 = vmatpush3.bf16.msra.mxu0 %v1642_v20 }
 0x5fb   : > { %1564 = vmatprep.subr.bf16.mxu0 %v1715_v0 }
 0x6b4   : > { %v969_v21 = vpop.f32.mrb[32].mxu1 }
 0x6b5   : > { %v970_v22 = vadd.f32 %v969_v21, %v1885_v13  ;;  %v1532_v24 = vpop.f32.mrb[33].mxu1 }
 0x6b6   : > { %v972_v25 = vpop.f32.mrb[34].mxu1  ;;  %v1366_v24 = vld [vmem:[%s2139_s5 + $0x2] sm:$0x1] }
 0x6b7   : > { %v973_v27 = vadd.f32 %v972_v25, %v1887_v15  ;;  %v1533_v28 = vpop.f32.mrb[35].mxu1  ;;  %v992_v29 = vmax.f32 %v970_v22, 0.0 }
 0x6b9   : > { %v993_v30 = vmax.f32 %v973_v27, 0.0 }
 0x6bb   : > { %v998_v31 = vpack.c.bf16 %v993_v30, %v992_v29  ;;  %v1380_v29 = vld [vmem:[%s2140_s6 + $0x2] ss:$0 sm:$0xff] }
 0x6bc   : > { %v977_v33 = vpop.f32.mrb[36].mxu1 }
 0x6bd   : > { %v978_v35 = vadd.f32 %v977_v33, %v1891_v23  ;;  %v1536_v36 = vpop.f32.mrb[37].mxu1  ;;  %1543 = vmatpush3.bf16.msra.mxu1 %v998_v31 }
 0x6be   : > { %v980_v38 = vpop.f32.mrb[38].mxu1  ;;  %1544 = vmatprep.subr.bf16.mxu1 %v1715_v0 }
 0x6bf   : > { %v981_v39 = vadd.f32 %v980_v38, %v1893_v26  ;;  %v1537_v40 = vpop.f32.mrb[39].mxu1  ;;  %v994_v13 = vmax.f32 %v978_v35, 0.0  ;;  %v1643_v26 = vld [vmem:[%s2138_s4 + $0xb0] sm:$0xff]  }
 0x6c0   : > { %1565 = vmatpush3.bf16.msra.mxu0 %v1643_v26 }
 0x6c1   : > { %v995_v41 = vmax.f32 %v981_v39, 0.0  ;;  %1566 = vmatprep.subr.bf16.mxu0 %v1715_v0 }
 0x6c3   : > { %v999_v42 = vpack.c.bf16 %v995_v41, %v994_v13 }
 0x6c4   : > { %v985_v45 = vpop.f32.mrb[40].mxu1 }
 0x6c5   : > { %v986_v15 = vadd.f32 %v985_v45, %v1898_v34  ;;  %v1540_v1 = vpop.f32.mrb[41].mxu1  ;;  %1545 = vmatpush3.bf16.msra.mxu1 %v999_v42  ;;  %v1644_v34 = vld [vmem:[%s2138_s4 + $0xb8] sm:$0xff]  }
 0x6c6   : > { %v988_v2 = vpop.f32.mrb[42].mxu1  ;;  %1546 = vmatprep.subr.bf16.mxu1 %v1715_v0  ;;  %1567 = vmatpush3.bf16.msra.mxu0 %v1644_v34 }
 0x6c7   : > { %v989_v23 = vadd.f32 %v988_v2, %v1900_v37  ;;  %v1541_v47 = vpop.f32.mrb[43].mxu1  ;;  %v996_v48 = vmax.f32 %v986_v15, 0.0 }
 0x6c9   : > { %v997_v49 = vmax.f32 %v989_v23, 0.0 }
 0x6cb   : > { %v1000_v50 = vpack.c.bf16 %v997_v49, %v996_v48 }
 0x6cd   : > { %1547 = vmatpush3.bf16.msra.mxu1 %v1000_v50 }
 0x6d0   : > { %1549 = vmatmul.mubr.msk.bf16.vlgmr.msra.gmra.mrb[44].mxu1 %vm469_vm2, %v1906_v46 }
 0x7a3   : > { %v1035_v37 = vpop.f32.mrb[44].mxu1 }
 0x7a4   : > { %v1550_v51 = vpop.f32.mrb[45].mxu1  ;;  %v1042_v53 = vadd.f32 %v1035_v37, %v2012_v17 }
 0x7a5   : > { %v1038_v52 = vpop.f32.mrb[46].mxu1 }
 0x7a6   : > { %v1043_v54 = vadd.f32 %v1038_v52, %v2015_v18  ;;  %v1551_v46 = vpop.f32.mrb[47].mxu1 }
 0x7a8   : > { %v1044_v55 = vpack.c.bf16 %v1043_v54, %v1042_v53 }
 0x7aa   : > { %1569 = vmatmul.mubr.bf16.vlgmr.msra.gmra.mrb[8].mxu0 %v1044_v55 }
 0x87d   : > { %v1127_v56 = vpop.f32.mrb[8].mxu0 }
 0x87e   : > { %v1570_v57 = vpop.f32.mrb[9].mxu0  ;;  %v1134_v59 = vmax.f32 %v1127_v56, 0.0 }
 0x87f   : > { %v1130_v58 = vpop.f32.mrb[10].mxu0 }
 0x880   : > { %v1135_v0 = vmax.f32 %v1130_v58, 0.0  ;;  %v1571_v60 = vpop.f32.mrb[11].mxu0 }
 0x882   : > { %v1136_v61 = vadd.f32 %v1135_v0, %v1134_v59 }
 0x884   : > { %v1137_v62 = vrot.slane %v1136_v61, 4 }
 0x886   : > { %v1138_v63 = vadd.f32 %v1137_v62, %v1136_v61 }
 0x888   : > { %v1139_v3 = vrot.slane %v1138_v63, 2 }
 0x88a   : > { %v1140_v7 = vadd.f32 %v1139_v3, %v1138_v63 }
 0x88c   : > { %v1141_v8 = vrot.slane %v1140_v7, 1 }
 0x88e   : > { %v1142_v9 = vadd.f32 %v1141_v8, %v1140_v7 }
 0x890   : > { %v1143_v10 = vmul.f32 0.0625, %v1142_v9 }
 0x892   : > { %v1144_v11 = vsub.f32 %v1134_v59, %v1143_v10  ;;  %v1145_v12 = vsub.f32 %v1135_v0, %v1143_v10 }
 0x894   : > { %v1146_v14 = vmul.f32 %v1144_v11, %v1144_v11  ;;  %v1147_v16 = vmul.f32 %v1145_v12, %v1145_v12 }
 0x896   : > { %v1148_v19 = vadd.f32 %v1147_v16, %v1146_v14 }
 0x898   : > { %v1149_v43 = vrot.slane %v1148_v19, 4 }
 0x89a   : > { %v1150_v4 = vadd.f32 %v1149_v43, %v1148_v19 }
 0x89c   : > { %v1151_v5 = vrot.slane %v1150_v4, 2 }
 0x89e   : > { %v1152_v6 = vadd.f32 %v1151_v5, %v1150_v4 }
 0x8a0   : > { %v1153_v44 = vrot.slane %v1152_v6, 1 }
 0x8a2   : > { %v1154_v20 = vadd.f32 %v1153_v44, %v1152_v6 }
 0x8a4   : > { %v1155_v21 = vmul.f32 0.0625, %v1154_v20 }
 0x8a6   : > { %v1156_v22 = vadd.f32 1e-05, %v1155_v21 }
 0x8a8   : > { %1649 = vrsqrt.f32 %v1156_v22 }
 0x8b2   : > { %v1650_v25 = vpop.eup %1649 }
 0x8b3   : > { %v1158_v27 = vmul.f32 %v1650_v25, %v1366_v24 }
 0x8b5   : > { %v1163_v28 = vrot.slane %v1158_v27, %v1928_v32 }
 0x8b7   : > { %v1165_v30 = vmul.f32 %v1163_v28, %v1144_v11  ;;  %v1166_v31 = vmul.f32 %v1163_v28, %v1145_v12 }
 0x8b9   : > { %v1173_v33 = vadd.f32 %v1380_v29, %v1165_v30  ;;  %v1174_v35 = vadd.f32 %v1380_v29, %v1166_v31 }
 0x8bb   : > { %v1175_v32 = vadd.f32 %v1173_v33, %v2012_v17  ;;  %v1176_v36 = vadd.f32 %v1174_v35, %v2015_v18 }
 0x8bd   : > { %1178 = vst [vmem:[%s316_s29 + $0x8] sm:$0xff] %v1176_v36  ;;  %1177 = vst [vmem:[%s316_s29] sm:$0xff] %v1175_v32 }
 0x8be   : > { %1664 = shalt.err (!%p1661_p3)
}
 0x8bf   : > { %s1665_s18 = scalar_lea.hbm %s2087_s16, 256  ;;  %s1669_s22 = scalar_lea.hbm %s2141_s7, 1024 }
 0x8c0   : > { %p1666_p4 = scmp.ne.s32.totalorder %s2087_s16, %s1665_s18  ;;  %p1670_p9 = scmp.lt.u32.totalorder %s2087_s16, %s2141_s7 }
 0x8c1   : > { %p1671_p10 = scmp.lt.u32.totalorder %s1669_s22, %s1665_s18  ;;  %p1673_p12 = scmp.lt.u32.totalorder %s1665_s18, %s2087_s16 }
 0x8c2   : > { %p1667_p7 = pnand %p1666_p4, %p1798_p5 }
 0x8c3   : > { %p1672_p11 = por %p1671_p10, %p1670_p9 }
 0x8c4   : > { %p1668_p8 = pneg %p1667_p7 }
 0x8c5   : > { %p1674_p13 = por %p1673_p12, %p1672_p11 }
 0x8c7   : > { %p1675_p0 = pnand %p1674_p13, %p1668_p8 }
 0x8c9   : > { %1678 = shalt.err (!%p1675_p0)
}
 0x8ca   : > { %s1718_s14 = smov 128   ;;  %s1719_s15 = smov 8  }
 0x8cb   : > { %1574 = dma.vmem_to_hbm [thread:$0]  (%p1798_p5), %s2089_s9, 256, %s2087_s16, %s2093_s28, %s1718_s14, %s1718_s14, %s1719_s15  }
 0x8cc PF: > { %p1580_p1 = scmp.ge.s32.totalorder %s1713_s27, 2  ;;  %s1208_s13 = sand.u32 1, %s1701_s24  }
 0x8cd   : > { %s1209_s17 = scalar_lea.sflag [#allocation3], %s1208_s13 }
 0x8ce   : > { %p1577_p2 = pnand %p1580_p1, %p1802_p6 }
 0x8d0   : > { %1696 = dma.done.wait (!%p1577_p2), %s1209_s17, 256  }
 0x8d1   : > { %1698 = vsyncadd (!%p1577_p2), %s1209_s17, 4294967040  ;;  %p17_p3 = scmp.ge.s32.totalorder %s1785_s30, 6   ;;  %s2144_s24 = smov %s1705_s25 }
 0x8d2   : > { %s2145_s25 = smov %s1709_s26  ;;  %s2146_s26 = smov %s1796_s10 }
 0x8d3   : > { %s2147_s27 = smov %s1785_s30  ;;  %19 = sbr.rel (!%p17_p3) target bundleno = 3 (0x3), region = 98 }
 0x8da   :  { %1214 = vsyncpa [#allocation3], 1 }
 0x8db   :  { %1216 = vsyncpa [#allocation3 + $0x1], 1 }

</bundles_post_ra>
